<compile_context>
chip_gen: v7x
topology: tpu7x:2x2x1
jax: 0.10.0
libtpu: 0.0.40
codegen_flags: <defaults>
</compile_context>

<pallas_src>
import functools

import jax
import jax.numpy as jnp
from jax import lax
from jax.experimental import pallas as pl
from jax.experimental.pallas import tpu as pltpu

BN_EPS = 1e-5
LANE = 128


def _round_up(n, m):
    return ((n + m - 1) // m) * m


def _generator_kernel(x_ref, w_ref, vec_ref, o_ref, *, inv_n, input_dim, dh):
    # Per-feature vectors: one (8, dh) slab, one DMA.
    #   rows 0..5 = bn{1,3,4} gamma/beta, row 6 = fc5 bias (lane-padded), row 7 unused.
    vecs = vec_ref[...]
    g1, bt1 = vecs[0:1, :], vecs[1:2, :]
    g3, bt3 = vecs[2:3, :], vecs[3:4, :]
    g4, bt4 = vecs[4:5, :], vecs[5:6, :]
    b5 = vecs[6:7, :]

    mm_dtype = w_ref.dtype  # bf16 (default) or f32; accumulation is always f32.

    def matmul(h, w):
        return jnp.dot(h.astype(mm_dtype), w, preferred_element_type=jnp.float32)

    def bn_tanh(h, gamma, beta):
        # Training-mode BatchNorm1d (biased batch variance), single-pass stats,
        # fused affine: y = tanh(h * scale + shift).  rsqrt/tanh go to the EUP.
        s = jnp.sum(h, axis=0, keepdims=True)
        s2 = jnp.sum(h * h, axis=0, keepdims=True)
        mean = s * inv_n
        var = jnp.maximum(s2 * inv_n - mean * mean, 0.0)
        scale = gamma * lax.rsqrt(var + BN_EPS)
        shift = beta - mean * scale
        return jnp.tanh(h * scale + shift)

    # Packed weight slab layout (rows):
    #   [0 : dh]        fc1  (only the first input_dim rows are real)
    #   [dh : 2*dh]     fc3
    #   [2*dh : 3*dh]   fc4
    #   [3*dh : 4*dh]   fc5  (only the first input_dim output columns are real)
    w1 = w_ref[0:input_dim, :]
    w3 = w_ref[dh:2 * dh, :]
    w4 = w_ref[2 * dh:3 * dh, :]
    w5 = w_ref[3 * dh:4 * dh, :]

    x = x_ref[...]  # real-width (B, input_dim) input — no HBM lane padding.
    # fc1/fc3/fc4 bias adds are dropped: BN's mean subtraction cancels them exactly.
    h = bn_tanh(matmul(x, w1), g1, bt1)
    h = bn_tanh(matmul(h, w3), g3, bt3)
    h = bn_tanh(matmul(h, w4), g4, bt4)
    out = matmul(h, w5) + b5                     # (B, dh); cols >= input_dim are exactly 0
    o_ref[...] = out[:, :input_dim].astype(o_ref.dtype)   # real-width store, no wrapper slice


def make_params(key, input_dim=10, hidden=100, dtype=jnp.float32):
    """Mirror GeneratorNet.__init__: Linear weights ~ N(0, 0.1) stored as (in, out),
    biases = 0, BN gamma = 1, beta = 0.  (fc2/bn2 exist in __init__ but are unused
    in forward, so they are omitted.)"""
    ks = jax.random.split(key, 4)
    dims = [(input_dim, hidden), (hidden, hidden), (hidden, hidden), (hidden, input_dim)]
    names = ["fc1", "fc3", "fc4", "fc5"]
    params = {}
    for k, name, (din, dout) in zip(ks, names, dims):
        params[f"{name}_w"] = (0.1 * jax.random.normal(k, (din, dout))).astype(dtype)
        params[f"{name}_b"] = jnp.zeros((1, dout), dtype)
    for name, d in [("bn1", hidden), ("bn3", hidden), ("bn4", hidden)]:
        params[f"{name}_g"] = jnp.ones((1, d), dtype)
        params[f"{name}_b"] = jnp.zeros((1, d), dtype)
    return params


def generator_forward(x, params, *, matmul_dtype=jnp.bfloat16):
    """x: (B, input_dim) float32 -> (B, input_dim) float32.

    matmul_dtype=jnp.bfloat16 (default) uses the bf16-native MXU path — valid on
    v5e/v6e/v7x, f32 accumulation.  Use jnp.float32 for bit-close parity with the
    PyTorch reference.
    """
    B, input_dim = x.shape
    hidden = params["fc1_w"].shape[1]
    dh = _round_up(hidden, LANE)
    assert input_dim <= dh

    # Pack all four weight matrices into ONE (4*dh, dh) slab -> a single DMA.
    # Zero padding keeps the padded activation lanes exactly zero through every
    # layer (BN of an all-zero column with gamma=0 padding maps to tanh(0)=0).
    w_slab = jnp.zeros((4 * dh, dh), jnp.float32)
    w_slab = w_slab.at[0:input_dim, 0:hidden].set(params["fc1_w"].astype(jnp.float32))
    w_slab = w_slab.at[dh:dh + hidden, 0:hidden].set(params["fc3_w"].astype(jnp.float32))
    w_slab = w_slab.at[2 * dh:2 * dh + hidden, 0:hidden].set(params["fc4_w"].astype(jnp.float32))
    w_slab = w_slab.at[3 * dh:3 * dh + hidden, 0:input_dim].set(params["fc5_w"].astype(jnp.float32))
    w_slab = w_slab.astype(matmul_dtype)

    # Pack the 7 surviving (1, D) vectors (bn gammas/betas + fc5 bias) into one
    # (8, dh) f32 slab -> a single parameter DMA.
    vec_rows = [
        params["bn1_g"], params["bn1_b"],
        params["bn3_g"], params["bn3_b"],
        params["bn4_g"], params["bn4_b"],
        params["fc5_b"],
    ]
    vec_slab = jnp.zeros((8, dh), jnp.float32)
    for i, v in enumerate(vec_rows):
        v = v.reshape(-1).astype(jnp.float32)
        vec_slab = vec_slab.at[i, : v.shape[0]].set(v)

    # Explicit scoped-VMEM budget (defaults are 16/32 MiB); capped at 64 MiB so the
    # same setting is also legal on v7x's smaller physical VMEM.
    w_bytes = w_slab.size * jnp.dtype(matmul_dtype).itemsize
    io_bytes = (x.size + B * input_dim) * 4
    act_bytes = 10 * B * dh * 4
    needed = 2 * (w_bytes + vec_slab.size * 4 + io_bytes) + act_bytes + (4 << 20)
    vmem_limit = int(min(max(needed, 32 << 20), 64 << 20))

    vmem = pl.BlockSpec(memory_space=pltpu.MemorySpace.VMEM)
    kernel = functools.partial(_generator_kernel, inv_n=1.0 / B,
                               input_dim=input_dim, dh=dh)
    return pl.pallas_call(
        kernel,
        out_shape=jax.ShapeDtypeStruct((B, input_dim), x.dtype),
        in_specs=[vmem, vmem, vmem],
        out_specs=vmem,
        compiler_params=pltpu.CompilerParams(vmem_limit_bytes=vmem_limit),
    )(x, w_slab, vec_slab)


def reference_forward(x, params):
    """Pure-JAX reference matching the PyTorch module in .train() mode."""
    def bn_tanh(h, g, b):
        mean = jnp.mean(h, axis=0, keepdims=True)
        var = jnp.mean((h - mean) ** 2, axis=0, keepdims=True)
        return jnp.tanh((h - mean) / jnp.sqrt(var + BN_EPS) * g + b)

    h = bn_tanh(x @ params["fc1_w"] + params["fc1_b"], params["bn1_g"], params["bn1_b"])
    h = bn_tanh(h @ params["fc3_w"] + params["fc3_b"], params["bn3_g"], params["bn3_b"])
    h = bn_tanh(h @ params["fc4_w"] + params["fc4_b"], params["bn4_g"], params["bn4_b"])
    return h @ params["fc5_w"] + params["fc5_b"]


if __name__ == "__main__":
    key = jax.random.PRNGKey(0)
    k_param, k_x = jax.random.split(key)

    input_dim = 10
    hidden = 100
    batch = 8

    params = make_params(k_param, input_dim=input_dim, hidden=hidden)
    x = jax.random.normal(k_x, (batch, input_dim), dtype=jnp.float32)

    ref = reference_forward(x, params)

    # f32 MXU operand path: tight parity with the pure-JAX / PyTorch reference.
    out_f32 = jax.block_until_ready(generator_forward(x, params, matmul_dtype=jnp.float32))
    assert out_f32.shape == (batch, input_dim), out_f32.shape
    assert out_f32.dtype == jnp.float32
    assert jnp.allclose(out_f32, ref, rtol=1e-4, atol=1e-4), float(jnp.max(jnp.abs(out_f32 - ref)))

    # Default path: bf16 MXU operands, f32 accumulation (looser tolerance vs f32 ref).
    out = jax.block_until_ready(generator_forward(x, params))
    assert out.shape == (batch, input_dim), out.shape
    assert out.dtype == jnp.float32
    assert jnp.allclose(out, ref, rtol=1e-1, atol=1e-1), float(jnp.max(jnp.abs(out - ref)))

    # Exercise non-trivial BN affine params and fc5 bias (checks slab packing).
    k1, k2 = jax.random.split(k_param)
    params2 = dict(params)
    for name in ["bn1", "bn3", "bn4"]:
        kk1, kk2, k1 = jax.random.split(k1, 3)
        params2[f"{name}_g"] = 1.0 + 0.1 * jax.random.normal(kk1, (1, hidden), jnp.float32)
        params2[f"{name}_b"] = 0.1 * jax.random.normal(kk2, (1, hidden), jnp.float32)
    params2["fc5_b"] = 0.1 * jax.random.normal(k2, (1, input_dim), jnp.float32)
    out2 = jax.block_until_ready(generator_forward(x, params2, matmul_dtype=jnp.float32))
    ref2 = reference_forward(x, params2)
    assert jnp.allclose(out2, ref2, rtol=1e-4, atol=1e-4), float(jnp.max(jnp.abs(out2 - ref2)))

    print("KERNEL_OK")
</pallas_src>

<mosaic_0001>
module attributes {stable_mosaic.version = 11 : i64} {
  func.func @_generator_kernel(%arg0: memref<8x10xf32, #tpu.memory_space<vmem>>, %arg1: memref<512x128xf32, #tpu.memory_space<vmem>>, %arg2: memref<8x128xf32, #tpu.memory_space<vmem>>, %arg3: memref<8x10xf32, #tpu.memory_space<vmem>>) attributes {dimension_semantics = [], scalar_prefetch = 0 : i64, scratch_operands = 0 : i64, tpu.core_type = #tpu.core_type<tc>} {
    %c0 = arith.constant 0 : index
    %c0_0 = arith.constant 0 : index
    %0 = vector.load %arg2[%c0, %c0_0] : memref<8x128xf32, #tpu.memory_space<vmem>>, vector<8x128xf32>
    %1 = vector.extract_strided_slice %0 {offsets = [0, 0], sizes = [1, 128], strides = [1, 1]} : vector<8x128xf32> to vector<1x128xf32>
    %2 = vector.extract_strided_slice %0 {offsets = [1, 0], sizes = [1, 128], strides = [1, 1]} : vector<8x128xf32> to vector<1x128xf32>
    %3 = vector.extract_strided_slice %0 {offsets = [2, 0], sizes = [1, 128], strides = [1, 1]} : vector<8x128xf32> to vector<1x128xf32>
    %4 = vector.extract_strided_slice %0 {offsets = [3, 0], sizes = [1, 128], strides = [1, 1]} : vector<8x128xf32> to vector<1x128xf32>
    %5 = vector.extract_strided_slice %0 {offsets = [4, 0], sizes = [1, 128], strides = [1, 1]} : vector<8x128xf32> to vector<1x128xf32>
    %6 = vector.extract_strided_slice %0 {offsets = [5, 0], sizes = [1, 128], strides = [1, 1]} : vector<8x128xf32> to vector<1x128xf32>
    %7 = vector.extract_strided_slice %0 {offsets = [6, 0], sizes = [1, 128], strides = [1, 1]} : vector<8x128xf32> to vector<1x128xf32>
    %c0_1 = arith.constant 0 : index
    %c0_2 = arith.constant 0 : index
    %8 = vector.load %arg1[%c0_1, %c0_2] : memref<512x128xf32, #tpu.memory_space<vmem>>, vector<10x128xf32>
    %c128 = arith.constant 128 : index
    %c0_3 = arith.constant 0 : index
    %9 = vector.load %arg1[%c128, %c0_3] : memref<512x128xf32, #tpu.memory_space<vmem>>, vector<128x128xf32>
    %c256 = arith.constant 256 : index
    %c0_4 = arith.constant 0 : index
    %10 = vector.load %arg1[%c256, %c0_4] : memref<512x128xf32, #tpu.memory_space<vmem>>, vector<128x128xf32>
    %c384 = arith.constant 384 : index
    %c0_5 = arith.constant 0 : index
    %11 = vector.load %arg1[%c384, %c0_5] : memref<512x128xf32, #tpu.memory_space<vmem>>, vector<128x128xf32>
    %c0_6 = arith.constant 0 : index
    %c0_7 = arith.constant 0 : index
    %12 = vector.load %arg0[%c0_6, %c0_7] : memref<8x10xf32, #tpu.memory_space<vmem>>, vector<8x10xf32>
    %cst = arith.constant dense<0.000000e+00> : vector<8x128xf32>
    %13 = tpu.matmul %12, %8, %cst {dimension_numbers = #tpu.dot_dimension_numbers<[1], [0], [0], [1], [0, 0, 1, 1], [], []>} : vector<8x10xf32>, vector<10x128xf32>, vector<8x128xf32> -> vector<8x128xf32>
    %cst_8 = arith.constant dense<0.000000e+00> : vector<128xf32>
    %14 = vector.multi_reduction <add>, %13, %cst_8 [0] : vector<8x128xf32> to vector<128xf32>
    %15 = vector.shape_cast %14 : vector<128xf32> to vector<1x128xf32>
    %16 = arith.mulf %13, %13 : vector<8x128xf32>
    %cst_9 = arith.constant dense<0.000000e+00> : vector<128xf32>
    %17 = vector.multi_reduction <add>, %16, %cst_9 [0] : vector<8x128xf32> to vector<128xf32>
    %18 = vector.shape_cast %17 : vector<128xf32> to vector<1x128xf32>
    %cst_10 = arith.constant 1.250000e-01 : f32
    %19 = vector.broadcast %cst_10 : f32 to vector<1x128xf32>
    %20 = arith.mulf %15, %19 : vector<1x128xf32>
    %cst_11 = arith.constant 1.250000e-01 : f32
    %21 = vector.broadcast %cst_11 : f32 to vector<1x128xf32>
    %22 = arith.mulf %18, %21 : vector<1x128xf32>
    %23 = arith.mulf %20, %20 : vector<1x128xf32>
    %24 = arith.subf %22, %23 : vector<1x128xf32>
    %cst_12 = arith.constant 0.000000e+00 : f32
    %25 = vector.broadcast %cst_12 : f32 to vector<1x128xf32>
    %26 = arith.maximumf %24, %25 : vector<1x128xf32>
    %cst_13 = arith.constant 9.99999974E-6 : f32
    %27 = vector.broadcast %cst_13 : f32 to vector<1x128xf32>
    %28 = arith.addf %26, %27 : vector<1x128xf32>
    %29 = math.rsqrt %28 : vector<1x128xf32>
    %30 = arith.mulf %1, %29 : vector<1x128xf32>
    %31 = arith.mulf %20, %30 : vector<1x128xf32>
    %32 = arith.subf %2, %31 : vector<1x128xf32>
    %33 = vector.broadcast %30 : vector<1x128xf32> to vector<8x128xf32>
    %34 = arith.mulf %13, %33 : vector<8x128xf32>
    %35 = vector.broadcast %32 : vector<1x128xf32> to vector<8x128xf32>
    %36 = arith.addf %34, %35 : vector<8x128xf32>
    %37 = math.tanh %36 : vector<8x128xf32>
    %cst_14 = arith.constant dense<0.000000e+00> : vector<8x128xf32>
    %38 = tpu.matmul %37, %9, %cst_14 {dimension_numbers = #tpu.dot_dimension_numbers<[1], [0], [0], [1], [0, 0, 1, 1], [], []>} : vector<8x128xf32>, vector<128x128xf32>, vector<8x128xf32> -> vector<8x128xf32>
    %cst_15 = arith.constant dense<0.000000e+00> : vector<128xf32>
    %39 = vector.multi_reduction <add>, %38, %cst_15 [0] : vector<8x128xf32> to vector<128xf32>
    %40 = vector.shape_cast %39 : vector<128xf32> to vector<1x128xf32>
    %41 = arith.mulf %38, %38 : vector<8x128xf32>
    %cst_16 = arith.constant dense<0.000000e+00> : vector<128xf32>
    %42 = vector.multi_reduction <add>, %41, %cst_16 [0] : vector<8x128xf32> to vector<128xf32>
    %43 = vector.shape_cast %42 : vector<128xf32> to vector<1x128xf32>
    %cst_17 = arith.constant 1.250000e-01 : f32
    %44 = vector.broadcast %cst_17 : f32 to vector<1x128xf32>
    %45 = arith.mulf %40, %44 : vector<1x128xf32>
    %cst_18 = arith.constant 1.250000e-01 : f32
    %46 = vector.broadcast %cst_18 : f32 to vector<1x128xf32>
    %47 = arith.mulf %43, %46 : vector<1x128xf32>
    %48 = arith.mulf %45, %45 : vector<1x128xf32>
    %49 = arith.subf %47, %48 : vector<1x128xf32>
    %cst_19 = arith.constant 0.000000e+00 : f32
    %50 = vector.broadcast %cst_19 : f32 to vector<1x128xf32>
    %51 = arith.maximumf %49, %50 : vector<1x128xf32>
    %cst_20 = arith.constant 9.99999974E-6 : f32
    %52 = vector.broadcast %cst_20 : f32 to vector<1x128xf32>
    %53 = arith.addf %51, %52 : vector<1x128xf32>
    %54 = math.rsqrt %53 : vector<1x128xf32>
    %55 = arith.mulf %3, %54 : vector<1x128xf32>
    %56 = arith.mulf %45, %55 : vector<1x128xf32>
    %57 = arith.subf %4, %56 : vector<1x128xf32>
    %58 = vector.broadcast %55 : vector<1x128xf32> to vector<8x128xf32>
    %59 = arith.mulf %38, %58 : vector<8x128xf32>
    %60 = vector.broadcast %57 : vector<1x128xf32> to vector<8x128xf32>
    %61 = arith.addf %59, %60 : vector<8x128xf32>
    %62 = math.tanh %61 : vector<8x128xf32>
    %cst_21 = arith.constant dense<0.000000e+00> : vector<8x128xf32>
    %63 = tpu.matmul %62, %10, %cst_21 {dimension_numbers = #tpu.dot_dimension_numbers<[1], [0], [0], [1], [0, 0, 1, 1], [], []>} : vector<8x128xf32>, vector<128x128xf32>, vector<8x128xf32> -> vector<8x128xf32>
    %cst_22 = arith.constant dense<0.000000e+00> : vector<128xf32>
    %64 = vector.multi_reduction <add>, %63, %cst_22 [0] : vector<8x128xf32> to vector<128xf32>
    %65 = vector.shape_cast %64 : vector<128xf32> to vector<1x128xf32>
    %66 = arith.mulf %63, %63 : vector<8x128xf32>
    %cst_23 = arith.constant dense<0.000000e+00> : vector<128xf32>
    %67 = vector.multi_reduction <add>, %66, %cst_23 [0] : vector<8x128xf32> to vector<128xf32>
    %68 = vector.shape_cast %67 : vector<128xf32> to vector<1x128xf32>
    %cst_24 = arith.constant 1.250000e-01 : f32
    %69 = vector.broadcast %cst_24 : f32 to vector<1x128xf32>
    %70 = arith.mulf %65, %69 : vector<1x128xf32>
    %cst_25 = arith.constant 1.250000e-01 : f32
    %71 = vector.broadcast %cst_25 : f32 to vector<1x128xf32>
    %72 = arith.mulf %68, %71 : vector<1x128xf32>
    %73 = arith.mulf %70, %70 : vector<1x128xf32>
    %74 = arith.subf %72, %73 : vector<1x128xf32>
    %cst_26 = arith.constant 0.000000e+00 : f32
    %75 = vector.broadcast %cst_26 : f32 to vector<1x128xf32>
    %76 = arith.maximumf %74, %75 : vector<1x128xf32>
    %cst_27 = arith.constant 9.99999974E-6 : f32
    %77 = vector.broadcast %cst_27 : f32 to vector<1x128xf32>
    %78 = arith.addf %76, %77 : vector<1x128xf32>
    %79 = math.rsqrt %78 : vector<1x128xf32>
    %80 = arith.mulf %5, %79 : vector<1x128xf32>
    %81 = arith.mulf %70, %80 : vector<1x128xf32>
    %82 = arith.subf %6, %81 : vector<1x128xf32>
    %83 = vector.broadcast %80 : vector<1x128xf32> to vector<8x128xf32>
    %84 = arith.mulf %63, %83 : vector<8x128xf32>
    %85 = vector.broadcast %82 : vector<1x128xf32> to vector<8x128xf32>
    %86 = arith.addf %84, %85 : vector<8x128xf32>
    %87 = math.tanh %86 : vector<8x128xf32>
    %cst_28 = arith.constant dense<0.000000e+00> : vector<8x128xf32>
    %88 = tpu.matmul %87, %11, %cst_28 {dimension_numbers = #tpu.dot_dimension_numbers<[1], [0], [0], [1], [0, 0, 1, 1], [], []>} : vector<8x128xf32>, vector<128x128xf32>, vector<8x128xf32> -> vector<8x128xf32>
    %89 = vector.broadcast %7 : vector<1x128xf32> to vector<8x128xf32>
    %90 = arith.addf %88, %89 : vector<8x128xf32>
    %91 = vector.extract_strided_slice %90 {offsets = [0, 0], sizes = [8, 10], strides = [1, 1]} : vector<8x128xf32> to vector<8x10xf32>
    %c0_29 = arith.constant 0 : index
    %c0_30 = arith.constant 0 : index
    %92 = vector.load %arg3[%c0_29, %c0_30] : memref<8x10xf32, #tpu.memory_space<vmem>>, vector<8x10xf32>
    tpu.vector_store %arg3[%c0_29, %c0_30], %91 {strides = array<i32>} : memref<8x10xf32, #tpu.memory_space<vmem>>, vector<8x10xf32>,
    return
  }
}

</mosaic_0001>

<bundles_post_ra>
// kernel: tpu_custom_call.1
= control target key start
LH: loop header
LB: loop body
LE: loop exit
PB: predicated region body
PF: predicated region fallthrough
CT: control target
= control target key end

     0   :  { %8 = vsyncpa [#allocation3], 0  ;;  %s1015_s0 = inlined_call_operand.hbm [shape: f32[8,10], index: 0, kind: input, shape index: {}]   ;;  %s1016_s1 = inlined_call_operand.hbm [shape: f32[512,128], index: 1, kind: input, shape index: {}]   ;;  %s1017_s2 = inlined_call_operand.hbm [shape: f32[8,128], index: 2, kind: input, shape index: {}]   ;;  %s1018_s3 = inlined_call_operand.hbm [shape: f32[8,10], index: 3, kind: output, shape index: {}]  }
   0x1   :  { %9 = vsyncpa [#allocation6], 0 }
   0x2   :  { %10 = vsyncpa [#allocation4], 0  ;;  %s884_s12 = smov [#allocation5]   ;;  %s790_s16 = scalar_lea.hbm %s1016_s1, 8192 }
   0x3   :  { %s26_s13 = sshll.u32 %s884_s12, 4  ;;  %p791_p0 = scmp.ne.s32.totalorder %s1016_s1, %s790_s16  ;;  %s27_s13 = int_to_ptr.vmem [resolvable:$true] %s26_s13 }
   0x4   :  { %p794_p1 = scmp.lt.u32.totalorder %s790_s16, %s1016_s1 }
   0x6   :  { %p796_p2 = pnand %p794_p1, %p791_p0 }
   0x8   :  { %799 = shalt.err (!%p796_p2)
}
   0x9   :  { %s800_s21 = scalar_lea.vmem %s27_s13, 8192  ;;  %p805_p4 = scmp.lt.s32.totalorder %s27_s13, %s27_s13 }
   0xa   :  { %p801_p3 = scmp.ne.s32.totalorder %s27_s13, %s800_s21  ;;  %p806_p5 = scmp.lt.s32.totalorder %s800_s21, %s800_s21 }
   0xc   :  { %p807_p6 = por %p806_p5, %p805_p4 }
   0xe   :  { %p808_p7 = pnand %p807_p6, %p801_p3 }
  0x10   :  { %811 = shalt.err (!%p808_p7)
}
  0x11   :  { %s885_s22 = smov 128   ;;  %s886_s23 = smov 8  }
  0x12   :  { %32 = dma.hbm_to_vmem [thread:$0]  %s1016_s1, 8192, %s27_s13, [#allocation6], %s885_s22, %s885_s22, %s886_s23  }
  0x13   :  { %s887_s26 = smov [#allocation2]   ;;  %s888_s28 = smov [#allocation7]  }
  0x14   :  { %s17_s27 = sshll.u32 %s887_s26, 4  ;;  %s39_s29 = sshll.u32 %s888_s28, 4  ;;  %s18_s27 = int_to_ptr.vmem [resolvable:$true] %s17_s27  ;;  %s40_s29 = int_to_ptr.vmem [resolvable:$true] %s39_s29 }
  0x15   :  { %s812_s5 = scalar_lea.hbm %s1015_s0, 128 }
  0x16   :  { %p813_p8 = scmp.ne.s32.totalorder %s1015_s0, %s812_s5  ;;  %p816_p9 = scmp.lt.u32.totalorder %s812_s5, %s1015_s0 }
  0x18   :  { %p818_p10 = pnand %p816_p9, %p813_p8 }
  0x1a   :  { %821 = shalt.err (!%p818_p10)
}
  0x1b   :  { %s822_s1 = scalar_lea.vmem %s18_s27, 128  ;;  %p827_p12 = scmp.lt.s32.totalorder %s18_s27, %s18_s27 }
  0x1c   :  { %p823_p11 = scmp.ne.s32.totalorder %s18_s27, %s822_s1  ;;  %p828_p13 = scmp.lt.s32.totalorder %s822_s1, %s822_s1 }
  0x1e   :  { %p829_p0 = por %p828_p13, %p827_p12 }
  0x20   :  { %p830_p1 = pnand %p829_p0, %p823_p11 }
  0x22   :  { %833 = shalt.err (!%p830_p1)
}
  0x23   :  { %20 = dma.hbm_to_vmem [thread:$0]  %s1015_s0, 128, %s18_s27, [#allocation3]  }
  0x24   :  { %s834_s14 = scalar_lea.hbm %s1017_s2, 128 }
  0x25   :  { %p835_p2 = scmp.ne.s32.totalorder %s1017_s2, %s834_s14  ;;  %p838_p3 = scmp.lt.u32.totalorder %s834_s14, %s1017_s2 }
  0x27   :  { %p840_p4 = pnand %p838_p3, %p835_p2 }
  0x29   :  { %843 = shalt.err (!%p840_p4)
}
  0x2a   :  { %s844_s19 = scalar_lea.vmem %s40_s29, 128  ;;  %p849_p6 = scmp.lt.s32.totalorder %s40_s29, %s40_s29 }
  0x2b   :  { %p845_p5 = scmp.ne.s32.totalorder %s40_s29, %s844_s19  ;;  %p850_p7 = scmp.lt.s32.totalorder %s844_s19, %s844_s19 }
  0x2d   :  { %p851_p8 = por %p850_p7, %p849_p6 }
  0x2f   :  { %p852_p9 = pnand %p851_p8, %p845_p5 }
  0x31   :  { %855 = shalt.err (!%p852_p9)
}
  0x32   :  { %42 = dma.hbm_to_vmem [thread:$0]  %s1017_s2, 128, %s40_s29, [#allocation6]  }
  0x33   :  { %878 = dma.done.wait [#allocation3], 128  }
  0x34   :  { %879 = vsyncadd [#allocation3], 4294967168 }
  0x35   :  { %880 = dma.done.wait [#allocation6], 8320  }
  0x36   :  { %881 = vsyncadd [#allocation6], 4294958976  ;;  %v889_v0 = vmov 0.0|0.0   ;;  %vm890_vm0 = vmmov 0   ;;  %v891_v1 = vmov 0.0   ;;  %vm108_vm1 = vcmask 1041408  }
  0x37   :  { %692 = vmatprep.subr.bf16.mxu0 %v889_v0  ;;  %696 = vmatprep.subr.bf16.mxu1 %v889_v0  ;;  %v53_v2 = vld [vmem:[#allocation5] sm:$0xff]  ;;  %v54_v3 = vld [vmem:[#allocation5 + $0x8] sm:$0x3]  ;;  %vm892_vm2 = vmmov 1   ;;  %v103_v5 = vld [vmem:[#allocation2] sm:$0xff]  ;;  %vm104_vm4 = vcmask 80896   ;;  %v208_v51 = vlaneseq }
  0x38   :  { %584 = vmatprep.mubr.msk.f32.mxu0 %vm890_vm0, %v891_v1  ;;  %619 = vmatprep.mubr.msk.f32.mxu1 %vm890_vm0, %v891_v1  ;;  %vm694_vm3 = vmpackc.low %vm108_vm1, %vm892_vm2  ;;  %v693_v4 = vpack.c.bf16 %v54_v3, %v53_v2  ;;  %v55_v6 = vld [vmem:[#allocation5 + $0x80] sm:$0xff]  ;;  %v56_v7 = vld [vmem:[#allocation5 + $0x88] sm:$0xff]  ;;  %s893_s2 = smov [#allocation8]  }
  0x39   :  { %v697_v8 = vpack.c.bf16 %v56_v7, %v55_v6  ;;  %v57_v9 = vld [vmem:[#allocation5 + $0x90] sm:$0xff]  ;;  %v58_v10 = vld [vmem:[#allocation5 + $0x98] sm:$0xff]  ;;  %v59_v12 = vld [vmem:[#allocation5 + $0xa0] sm:$0xff]  ;;  %v968_v52 = vshrl.u32 %v208_v51, 7  ;;  %s514_s21 = sshll.u32 %s893_s2, 4  ;;  %s515_s21 = int_to_ptr.vmem [resolvable:$true] %s514_s21 }
  0x3a   :  { %695 = vmatpush3.bf16.msk.msra.mxu0 %vm694_vm3, %v693_v4  ;;  %v700_v11 = vpack.c.bf16 %v58_v10, %v57_v9  ;;  %v60_v13 = vld [vmem:[#allocation5 + $0xa8] sm:$0xff]  ;;  %v61_v15 = vld [vmem:[#allocation5 + $0xb0] sm:$0xff]  ;;  %v62_v16 = vld [vmem:[#allocation5 + $0xb8] sm:$0xff]  ;;  %s856_s22 = scalar_lea.vmem %s515_s21, 128  ;;  %p861_p11 = scmp.lt.s32.totalorder %s515_s21, %s515_s21 }
  0x3b   :  { %720 = vmatprep.subr.bf16.mxu0 %v889_v0  ;;  %698 = vmatpush3.bf16.msra.mxu1 %v697_v8  ;;  %v703_v14 = vpack.c.bf16 %v60_v13, %v59_v12  ;;  %v706_v17 = vpack.c.bf16 %v62_v16, %v61_v15  ;;  %v63_v18 = vld [vmem:[#allocation5 + $0xc0] sm:$0xff]  ;;  %v64_v19 = vld [vmem:[#allocation5 + $0xc8] sm:$0xff]  ;;  %v65_v21 = vld [vmem:[#allocation5 + $0xd0] sm:$0xff]  ;;  %v210_v56 = vsub.s32 0, %v968_v52  ;;  %v215_v60 = vsub.s32 1, %v968_v52  ;;  %p857_p10 = scmp.ne.s32.totalorder %s515_s21, %s856_s22  ;;  %p862_p12 = scmp.lt.s32.totalorder %s856_s22, %s856_s22 }
  0x3c   :  { %699 = vmatprep.subr.bf16.mxu1 %v889_v0  ;;  %v709_v20 = vpack.c.bf16 %v64_v19, %v63_v18  ;;  %v66_v22 = vld [vmem:[#allocation5 + $0xd8] sm:$0xff]  ;;  %v67_v24 = vld [vmem:[#allocation5 + $0xe0] sm:$0xff]  ;;  %v68_v25 = vld [vmem:[#allocation5 + $0xe8] sm:$0xff] }
  0x3d   :  { %585 = vmatmul.mubr.msk.f32.vlgmr.msra.gmra.mrb[0].mxu0 %vm104_vm4, %v103_v5  ;;  %v712_v23 = vpack.c.bf16 %v66_v22, %v65_v21  ;;  %v715_v26 = vpack.c.bf16 %v68_v25, %v67_v24  ;;  %v69_v27 = vld [vmem:[#allocation5 + $0xf0] sm:$0xff]  ;;  %v70_v28 = vld [vmem:[#allocation5 + $0xf8] sm:$0xff]  ;;  %v970_v53 = vld [vmem:[#allocation7] sm:$0xff]  ;;  %p863_p13 = por %p862_p12, %p861_p11 }
  0x3e   :  { %654 = vmatprep.mubr.msk.f32.mxu0 %vm890_vm0, %v891_v1  ;;  %v718_v29 = vpack.c.bf16 %v70_v28, %v69_v27  ;;  %v71_v4 = vld [vmem:[#allocation5 + $0x100] sm:$0xff]  ;;  %v72_v5 = vld [vmem:[#allocation5 + $0x108] sm:$0xff]  ;;  %v73_v7 = vld [vmem:[#allocation5 + $0x110] sm:$0xff] }
  0x3f   :  { %701 = vmatpush3.bf16.msra.mxu1 %v700_v11  ;;  %v721_v6 = vpack.c.bf16 %v72_v5, %v71_v4  ;;  %v74_v8 = vld [vmem:[#allocation5 + $0x118] sm:$0xff]  ;;  %v75_v10 = vld [vmem:[#allocation5 + $0x120] sm:$0xff]  ;;  %v76_v11 = vld [vmem:[#allocation5 + $0x128] sm:$0xff]  ;;  %p864_p0 = pnand %p863_p13, %p857_p10 }
  0x40   :  { %702 = vmatprep.subr.bf16.mxu1 %v889_v0  ;;  %v724_v9 = vpack.c.bf16 %v74_v8, %v73_v7  ;;  %v727_v12 = vpack.c.bf16 %v76_v11, %v75_v10  ;;  %v77_v13 = vld [vmem:[#allocation5 + $0x130] sm:$0xff]  ;;  %v79_v15 = vld [vmem:[#allocation5 + $0x140] sm:$0xff]  ;;  %v80_v16 = vld [vmem:[#allocation5 + $0x148] sm:$0xff] }
  0x41   :  { %722 = vmatpush3.bf16.msra.mxu0 %v721_v6  ;;  %v81_v18 = vld [vmem:[#allocation5 + $0x150] sm:$0xff]  ;;  %v82_v19 = vld [vmem:[#allocation5 + $0x158] sm:$0xff]  ;;  %v83_v21 = vld [vmem:[#allocation5 + $0x160] sm:$0xff] }
  0x42   :  { %723 = vmatprep.subr.bf16.mxu0 %v889_v0  ;;  %v84_v22 = vld [vmem:[#allocation5 + $0x168] sm:$0xff]  ;;  %v85_v24 = vld [vmem:[#allocation5 + $0x170] sm:$0xff]  ;;  %v86_v25 = vld [vmem:[#allocation5 + $0x178] sm:$0xff] }
  0x43   :  { %704 = vmatpush3.bf16.msra.mxu1 %v703_v14  ;;  %v90_v4 = vld [vmem:[#allocation5 + $0x198] sm:$0xff]  ;;  %v91_v6 = vld [vmem:[#allocation5 + $0x1a0] sm:$0xff]  ;;  %v92_v7 = vld [vmem:[#allocation5 + $0x1a8] sm:$0xff] }
  0x44   :  { %705 = vmatprep.subr.bf16.mxu1 %v889_v0  ;;  %v751_v8 = vpack.c.bf16 %v92_v7, %v91_v6  ;;  %v94_v10 = vld [vmem:[#allocation5 + $0x1b8] sm:$0xff] }
  0x45   :  { %725 = vmatpush3.bf16.msra.mxu0 %v724_v9  ;;  %v93_v9 = vld [vmem:[#allocation5 + $0x1b0] sm:$0xff] }
  0x46   :  { %726 = vmatprep.subr.bf16.mxu0 %v889_v0  ;;  %v754_v11 = vpack.c.bf16 %v94_v10, %v93_v9 }
  0x47   :  { %707 = vmatpush3.bf16.msra.mxu1 %v706_v17  ;;  %v733_v17 = vpack.c.bf16 %v80_v16, %v79_v15  ;;  %v98_v15 = vld [vmem:[#allocation5 + $0x1d8] sm:$0xff] }
  0x48   :  { %708 = vmatprep.subr.bf16.mxu1 %v889_v0 }
  0x49   :  { %728 = vmatpush3.bf16.msra.mxu0 %v727_v12  ;;  %v95_v12 = vld [vmem:[#allocation5 + $0x1c0] sm:$0xff] }
  0x4a   :  { %729 = vmatprep.subr.bf16.mxu0 %v889_v0 }
  0x4b   :  { %710 = vmatpush3.bf16.msra.mxu1 %v709_v20  ;;  %v736_v20 = vpack.c.bf16 %v82_v19, %v81_v18  ;;  %v100_v18 = vld [vmem:[#allocation5 + $0x1e8] sm:$0xff] }
  0x4c   :  { %711 = vmatprep.subr.bf16.mxu1 %v889_v0 }
  0x4f   :  { %713 = vmatpush3.bf16.msra.mxu1 %v712_v23  ;;  %v739_v23 = vpack.c.bf16 %v84_v22, %v83_v21  ;;  %v102_v21 = vld [vmem:[#allocation5 + $0x1f8] sm:$0xff] }
  0x50   :  { %714 = vmatprep.subr.bf16.mxu1 %v889_v0 }
  0x53   :  { %716 = vmatpush3.bf16.msra.mxu1 %v715_v26  ;;  %v742_v26 = vpack.c.bf16 %v86_v25, %v85_v24 }
  0x54   :  { %717 = vmatprep.subr.bf16.mxu1 %v889_v0 }
  0x57   :  { %719 = vmatpush3.bf16.msra.mxu1 %v718_v29 }
  0x58   :  { %744 = vmatprep.subr.bf16.mxu1 %v889_v0 }
 0x110   :  { %v178_v30 = vpop.f32.mrb[0].mxu0 }
 0x111   :  { %v182_v31 = vrot.slane %v178_v30, 4  ;;  %v188_v32 = vmul.f32 %v178_v30, %v178_v30  ;;  %v586_v33 = vpop.f32.mrb[1].mxu0 }
 0x113   :  { %v183_v34 = vadd.f32 %v182_v31, %v178_v30  ;;  %v189_v35 = vrot.slane %v188_v32, 4 }
 0x115   :  { %v184_v36 = vrot.slane %v183_v34, 2  ;;  %v190_v37 = vadd.f32 %v189_v35, %v188_v32 }
 0x117   :  { %v185_v38 = vadd.f32 %v184_v36, %v183_v34  ;;  %v191_v39 = vrot.slane %v190_v37, 2 }
 0x119   :  { %v186_v40 = vrot.slane %v185_v38, 1  ;;  %v192_v41 = vadd.f32 %v191_v39, %v190_v37 }
 0x11b   :  { %v187_v42 = vadd.f32 %v186_v40, %v185_v38  ;;  %v193_v43 = vrot.slane %v192_v41, 1 }
 0x11d   :  { %v194_v44 = vadd.f32 %v193_v43, %v192_v41  ;;  %v195_v45 = vmul.f32 0.125, %v187_v42 }
 0x11f   :  { %v196_v46 = vmul.f32 0.125, %v194_v44  ;;  %v197_v47 = vmul.f32 %v195_v45, %v195_v45 }
 0x121   :  { %v198_v48 = vsub.f32 %v196_v46, %v197_v47 }
 0x123   :  { %v199_v49 = vmax.f32 %v198_v48, 0.0 }
 0x125   :  { %v200_v50 = vadd.f32 1e-05, %v199_v49 }
 0x127   :  { %778 = vrsqrt.f32 %v200_v50  ;;  %v317_v50 = vsub.s32 2, %v968_v52 }
 0x131   :  { %v779_v54 = vpop.eup %778 }
 0x132   :  { %v202_v55 = vmul.f32 %v779_v54, %v970_v53 }
 0x134   :  { %v203_v57 = vmul.f32 %v202_v55, %v195_v45  ;;  %v211_v59 = vrot.slane %v202_v55, %v210_v56  ;;  %v322_v56 = vsub.s32 3, %v968_v52 }
 0x136   :  { %v205_v58 = vrot.slane %v203_v57, 7  ;;  %v212_v62 = vmul.f32 %v211_v59, %v178_v30 }
 0x138   :  { %v207_v61 = vsub.f32 %v970_v53, %v205_v58 }
 0x13a   :  { %v216_v63 = vrot.slane %v207_v61, %v215_v60 }
 0x13c   :  { %v217_v2 = vadd.f32 %v216_v63, %v212_v62  ;;  %v87_v62 = vld [vmem:[#allocation5 + $0x180] sm:$0xff]  ;;  %v88_v63 = vld [vmem:[#allocation5 + $0x188] sm:$0xff] }
 0x13e   :  { %780 = vtanh.f32 %v217_v2  ;;  %v745_v2 = vpack.c.bf16 %v88_v63, %v87_v62 }
 0x148   :  { %v781_v3 = vpop.eup %780 }
 0x149   :  { %620 = vmatmul.mubr.f32.vlgmr.msra.gmra.mrb[0].mxu1 %v781_v3  ;;  %v89_v3 = vld [vmem:[#allocation5 + $0x190] sm:$0xff] }
 0x14a   :  { %689 = vmatprep.mubr.msk.f32.mxu1 %vm890_vm0, %v891_v1  ;;  %v78_v1 = vld [vmem:[#allocation5 + $0x138] sm:$0xff]  ;;  %746 = vmatpush3.bf16.msra.mxu1 %v745_v2  ;;  %v748_v5 = vpack.c.bf16 %v90_v4, %v89_v3 }
 0x14b   :  { %v730_v14 = vpack.c.bf16 %v78_v1, %v77_v13  ;;  %747 = vmatprep.subr.bf16.mxu1 %v889_v0  ;;  %v96_v13 = vld [vmem:[#allocation5 + $0x1c8] sm:$0xff] }
 0x14c   :  { %v757_v1 = vpack.c.bf16 %v96_v13, %v95_v12 }
 0x14d   :  { %731 = vmatpush3.bf16.msra.mxu0 %v730_v14  ;;  %v97_v14 = vld [vmem:[#allocation5 + $0x1d0] sm:$0xff] }
 0x14e   :  { %732 = vmatprep.subr.bf16.mxu0 %v889_v0  ;;  %749 = vmatpush3.bf16.msra.mxu1 %v748_v5  ;;  %v760_v16 = vpack.c.bf16 %v98_v15, %v97_v14 }
 0x14f   :  { %750 = vmatprep.subr.bf16.mxu1 %v889_v0 }
 0x151   :  { %734 = vmatpush3.bf16.msra.mxu0 %v733_v17  ;;  %v99_v17 = vld [vmem:[#allocation5 + $0x1e0] sm:$0xff] }
 0x152   :  { %735 = vmatprep.subr.bf16.mxu0 %v889_v0  ;;  %752 = vmatpush3.bf16.msra.mxu1 %v751_v8  ;;  %v763_v19 = vpack.c.bf16 %v100_v18, %v99_v17 }
 0x153   :  { %753 = vmatprep.subr.bf16.mxu1 %v889_v0 }
 0x155   :  { %737 = vmatpush3.bf16.msra.mxu0 %v736_v20  ;;  %v101_v20 = vld [vmem:[#allocation5 + $0x1f0] sm:$0xff] }
 0x156   :  { %738 = vmatprep.subr.bf16.mxu0 %v889_v0  ;;  %755 = vmatpush3.bf16.msra.mxu1 %v754_v11  ;;  %v766_v22 = vpack.c.bf16 %v102_v21, %v101_v20 }
 0x157   :  { %756 = vmatprep.subr.bf16.mxu1 %v889_v0 }
 0x159   :  { %740 = vmatpush3.bf16.msra.mxu0 %v739_v23 }
 0x15a   :  { %741 = vmatprep.subr.bf16.mxu0 %v889_v0  ;;  %758 = vmatpush3.bf16.msra.mxu1 %v757_v1 }
 0x15b   :  { %759 = vmatprep.subr.bf16.mxu1 %v889_v0 }
 0x15d   :  { %743 = vmatpush3.bf16.msra.mxu0 %v742_v26 }
 0x15e   :  { %761 = vmatpush3.bf16.msra.mxu1 %v760_v16 }
 0x15f   :  { %762 = vmatprep.subr.bf16.mxu1 %v889_v0 }
 0x162   :  { %764 = vmatpush3.bf16.msra.mxu1 %v763_v19 }
 0x163   :  { %765 = vmatprep.subr.bf16.mxu1 %v889_v0 }
 0x166   :  { %767 = vmatpush3.bf16.msra.mxu1 %v766_v22 }
 0x21c   :  { %v285_v27 = vpop.f32.mrb[0].mxu1 }
 0x21d   :  { %v289_v28 = vrot.slane %v285_v27, 4  ;;  %v295_v29 = vmul.f32 %v285_v27, %v285_v27  ;;  %v621_v30 = vpop.f32.mrb[1].mxu1 }
 0x21f   :  { %v290_v31 = vadd.f32 %v289_v28, %v285_v27  ;;  %v296_v32 = vrot.slane %v295_v29, 4 }
 0x221   :  { %v291_v33 = vrot.slane %v290_v31, 2  ;;  %v297_v34 = vadd.f32 %v296_v32, %v295_v29 }
 0x223   :  { %v292_v35 = vadd.f32 %v291_v33, %v290_v31  ;;  %v298_v36 = vrot.slane %v297_v34, 2 }
 0x225   :  { %v293_v37 = vrot.slane %v292_v35, 1  ;;  %v299_v38 = vadd.f32 %v298_v36, %v297_v34 }
 0x227   :  { %v294_v39 = vadd.f32 %v293_v37, %v292_v35  ;;  %v300_v40 = vrot.slane %v299_v38, 1 }
 0x229   :  { %v301_v41 = vadd.f32 %v300_v40, %v299_v38  ;;  %v302_v42 = vmul.f32 0.125, %v294_v39 }
 0x22b   :  { %v303_v43 = vmul.f32 0.125, %v301_v41  ;;  %v304_v44 = vmul.f32 %v302_v42, %v302_v42 }
 0x22d   :  { %v305_v45 = vsub.f32 %v303_v43, %v304_v44 }
 0x22f   :  { %v306_v46 = vmax.f32 %v305_v45, 0.0  ;;  %v424_v45 = vsub.s32 4, %v968_v52 }
 0x231   :  { %v307_v47 = vadd.f32 1e-05, %v306_v46 }
 0x233   :  { %782 = vrsqrt.f32 %v307_v47 }
 0x23d   :  { %v783_v48 = vpop.eup %782 }
 0x23e   :  { %v309_v49 = vmul.f32 %v783_v48, %v970_v53 }
 0x240   :  { %v310_v51 = vmul.f32 %v309_v49, %v302_v42  ;;  %v318_v55 = vrot.slane %v309_v49, %v317_v50  ;;  %v429_v49 = vsub.s32 5, %v968_v52 }
 0x242   :  { %v312_v54 = vrot.slane %v310_v51, 7  ;;  %v319_v58 = vmul.f32 %v318_v55, %v285_v27 }
 0x244   :  { %v314_v57 = vsub.f32 %v970_v53, %v312_v54 }
 0x246   :  { %v323_v59 = vrot.slane %v314_v57, %v322_v56  ;;  %v435_v57 = vsub.s32 6, %v968_v52 }
 0x248   :  { %v324_v60 = vadd.f32 %v323_v59, %v319_v58  ;;  %v436_v58 = vrot.slane %v970_v53, %v435_v57 }
 0x24a   :  { %784 = vtanh.f32 %v324_v60 }
 0x254   :  { %v785_v61 = vpop.eup %784 }
 0x255   :  { %655 = vmatmul.mubr.f32.vlgmr.msra.gmra.mrb[2].mxu0 %v785_v61 }
 0x328   :  { %v392_v23 = vpop.f32.mrb[2].mxu0 }
 0x329   :  { %v396_v24 = vrot.slane %v392_v23, 4  ;;  %v402_v25 = vmul.f32 %v392_v23, %v392_v23  ;;  %v656_v26 = vpop.f32.mrb[3].mxu0 }
 0x32b   :  { %v397_v27 = vadd.f32 %v396_v24, %v392_v23  ;;  %v403_v28 = vrot.slane %v402_v25, 4 }
 0x32d   :  { %v398_v29 = vrot.slane %v397_v27, 2  ;;  %v404_v30 = vadd.f32 %v403_v28, %v402_v25 }
 0x32f   :  { %v399_v31 = vadd.f32 %v398_v29, %v397_v27  ;;  %v405_v32 = vrot.slane %v404_v30, 2 }
 0x331   :  { %v400_v33 = vrot.slane %v399_v31, 1  ;;  %v406_v34 = vadd.f32 %v405_v32, %v404_v30 }
 0x333   :  { %v401_v35 = vadd.f32 %v400_v33, %v399_v31  ;;  %v407_v36 = vrot.slane %v406_v34, 1 }
 0x335   :  { %v408_v37 = vadd.f32 %v407_v36, %v406_v34  ;;  %v409_v38 = vmul.f32 0.125, %v401_v35 }
 0x337   :  { %v410_v39 = vmul.f32 0.125, %v408_v37  ;;  %v411_v40 = vmul.f32 %v409_v38, %v409_v38 }
 0x339   :  { %v412_v0 = vsub.f32 %v410_v39, %v411_v40 }
 0x33b   :  { %v413_v41 = vmax.f32 %v412_v0, 0.0 }
 0x33d   :  { %v414_v42 = vadd.f32 1e-05, %v413_v41 }
 0x33f   :  { %786 = vrsqrt.f32 %v414_v42 }
 0x349   :  { %v787_v43 = vpop.eup %786 }
 0x34a   :  { %v416_v44 = vmul.f32 %v787_v43, %v970_v53 }
 0x34c   :  { %v417_v46 = vmul.f32 %v416_v44, %v409_v38  ;;  %v425_v48 = vrot.slane %v416_v44, %v424_v45 }
 0x34e   :  { %v419_v47 = vrot.slane %v417_v46, 7  ;;  %v426_v51 = vmul.f32 %v425_v48, %v392_v23 }
 0x350   :  { %v421_v50 = vsub.f32 %v970_v53, %v419_v47 }
 0x352   :  { %v430_v54 = vrot.slane %v421_v50, %v429_v49 }
 0x354   :  { %v431_v55 = vadd.f32 %v430_v54, %v426_v51 }
 0x356   :  { %788 = vtanh.f32 %v431_v55 }
 0x360   :  { %v789_v56 = vpop.eup %788 }
 0x361   :  { %690 = vmatmul.mubr.f32.vlgmr.msra.gmra.mrb[2].mxu1 %v789_v56 }
 0x434   :  { %v503_v59 = vpop.f32.mrb[2].mxu1 }
 0x435   :  { %v504_v60 = vadd.f32 %v503_v59, %v436_v58  ;;  %v691_v61 = vpop.f32.mrb[3].mxu1 }
 0x437   :  { %507 = vst.msk [vmem:[#allocation8] sm:$0xff] %vm104_vm4, %v504_v60 }
 0x438   :  { %867 = shalt.err (!%p864_p0)
}
 0x439   :  { %s868_s25 = scalar_lea.hbm %s1018_s3, 128 }
 0x43a   :  { %p869_p1 = scmp.ne.s32.totalorder %s1018_s3, %s868_s25  ;;  %p872_p2 = scmp.lt.u32.totalorder %s868_s25, %s1018_s3 }
 0x43c   :  { %p874_p3 = pnand %p872_p2, %p869_p1 }
 0x43e   :  { %877 = shalt.err (!%p874_p3)
}
 0x43f   :  { %517 = dma.vmem_to_hbm [thread:$0]  %s515_s21, 128, %s1018_s3, [#allocation4]  }
 0x440   :  { %882 = dma.done.wait [#allocation4], 128  }
 0x441   :  { %883 = vsyncadd [#allocation4], 4294967168 }
 0x442   :  { %521 = vsyncpa [#allocation3], 1 }
 0x443   :  { %522 = vsyncpa [#allocation6], 1 }
 0x444   :  { %523 = vsyncpa [#allocation4], 1 }

</bundles_post_ra>
